<compile_context>
chip_gen: v5e
topology: v5e:2x2
jax: 0.10.0
libtpu: 0.0.40
codegen_flags: <defaults>
</compile_context>

<pallas_src>
import jax
import jax.numpy as jnp
from jax.experimental import pallas as pl
from jax.experimental.pallas import tpu as pltpu


def _round_up(x, m):
    return (x + m - 1) // m * m


def _choose_tn(c_pad):
    """Largest lane-dense channel tile whose double-buffered f32 w2 block is <= 8 MiB."""
    budget = 8 * 1024 * 1024
    for tn in (c_pad, 1024, 512, 256, 128):
        if c_pad % tn == 0 and 2 * c_pad * tn * 4 <= budget:
            return tn
    return 128


def time_embedding_kernel(t_ref, w1_ref, b1_ref, w2_ref, b2_ref, o_ref, h_ref):
    # t_ref:  (tm, 1)       f32   timestep column
    # w1_ref: (1, C_pad)    f32   first-linear weight (row vector, K = 1)
    # b1_ref: (1, C_pad)    f32
    # w2_ref: (C_pad, tn)   f32   second-linear weight, N-tiled
    # b2_ref: (1, tn)       f32
    # o_ref:  (tm, tn)      f32
    # h_ref:  (tm, C_pad)   f32   VMEM cache of SiLU(t * w1 + b1), one per batch tile
    j = pl.program_id(1)

    @pl.when(j == 0)
    def _():
        # First linear is K=1 -> VPU broadcast multiply-add (not an MXU matmul),
        # followed by SiLU (EUP exp + VPU div).  Computed once per batch tile.
        h = t_ref[...] * w1_ref[...] + b1_ref[...]
        h_ref[...] = h / (1.0 + jnp.exp(-h))          # h * sigmoid(h)

    # Second linear on the MXU: f32 operands, f32 accumulation (matches the
    # PyTorch float32 forward).
    o_ref[...] = (
        jnp.dot(h_ref[...], w2_ref[...], preferred_element_type=jnp.float32)
        + b2_ref[...]
    ).astype(o_ref.dtype)


def prepare_time_embedding_params(w1, b1, w2, b2):
    """One-time (model-init) zero-padding of the weights to lane-dense shapes.

    Hoisted out of the per-call path so the per-call wrapper never re-reads /
    re-writes w2 (this op is HBM-bound on the w2 read).
    Layout convention: w1 is layers[0].weight.T (shape [1, C]), w2 is
    layers[2].weight.T (shape [C, C]), so forward is (t @ w1 + b1) -> SiLU -> @ w2 + b2.
    """
    C = w1.shape[-1]
    C_pad = _round_up(C, 128)
    w1_p = jnp.zeros((1, C_pad), jnp.float32).at[:, :C].set(
        w1.reshape(1, C).astype(jnp.float32))
    b1_p = jnp.zeros((1, C_pad), jnp.float32).at[:, :C].set(
        b1.reshape(1, C).astype(jnp.float32))
    w2_p = jnp.zeros((C_pad, C_pad), jnp.float32).at[:C, :C].set(
        w2.astype(jnp.float32))
    b2_p = jnp.zeros((1, C_pad), jnp.float32).at[:, :C].set(
        b2.reshape(1, C).astype(jnp.float32))
    return {"w1": w1_p, "b1": b1_p, "w2": w2_p, "b2": b2_p, "n_channels": C}


def time_embedding(t, params):
    """t: [B] timesteps. params: output of prepare_time_embedding_params. Returns [B, C] f32."""
    C = params["n_channels"]
    C_pad = params["w1"].shape[-1]
    B = t.shape[0]

    # --- tiling ------------------------------------------------------------
    # Whole batch in one tile when it fits (w2 then streamed exactly once).
    # tm = 256 fills the 256x256 MXU M dim on v6e/v7x; v5e's 4x(128x128) MXU is
    # equally happy with multiples of 128.
    tm = min(256, _round_up(B, 8))
    B_pad = _round_up(B, tm)
    tn = _choose_tn(C_pad)
    grid = (B_pad // tm, C_pad // tn)

    # Per-call padding only touches t (tiny); the weights are already padded.
    t2d = jnp.zeros((B_pad, 1), jnp.float32).at[:B, 0].set(t.astype(jnp.float32))

    # Rough VMEM estimate (double-buffered blocks + h scratch); raise the scoped
    # limit only when we exceed a conservative budget (v5e default scoped = 16 MiB).
    est_vmem = (2 * C_pad * tn * 4 + 2 * tm * tn * 4 + tm * C_pad * 4
                + 6 * C_pad * 4 + 4 * tm * 4)
    vmem_limit = int(est_vmem * 3 // 2) if est_vmem > 12 * 1024 * 1024 else None

    out = pl.pallas_call(
        time_embedding_kernel,
        out_shape=jax.ShapeDtypeStruct((B_pad, C_pad), jnp.float32),
        grid=grid,
        in_specs=[
            pl.BlockSpec((tm, 1), lambda i, j: (i, 0)),        # t (per batch tile)
            pl.BlockSpec((1, C_pad), lambda i, j: (0, 0)),     # w1 (resident)
            pl.BlockSpec((1, C_pad), lambda i, j: (0, 0)),     # b1 (resident)
            pl.BlockSpec((C_pad, tn), lambda i, j: (0, j)),    # w2 (N-tiled)
            pl.BlockSpec((1, tn), lambda i, j: (0, j)),        # b2
        ],
        out_specs=pl.BlockSpec((tm, tn), lambda i, j: (i, j)),
        scratch_shapes=[pltpu.VMEM((tm, C_pad), jnp.float32)],  # h cache
        compiler_params=pltpu.CompilerParams(
            # batch tiles are independent (megacore on v7x); the channel axis
            # carries the h cache, so it must stay "arbitrary" (in-order).
            dimension_semantics=("parallel", "arbitrary"),
            vmem_limit_bytes=vmem_limit,
        ),
    )(t2d, params["w1"], params["b1"], params["w2"], params["b2"])

    if B_pad == B and C_pad == C:
        return out
    return out[:B, :C]


def time_embedding_ref(t, w1, b1, w2, b2):
    """Pure-JAX float32 reference matching the PyTorch forward."""
    t2d = t.reshape(-1, 1).astype(jnp.float32)
    h = t2d * w1.reshape(1, -1) + b1.reshape(1, -1)
    h = h * jax.nn.sigmoid(h)
    return h @ w2 + b2.reshape(1, -1)


def _make_case(key, B, n_channels):
    k_t, k_w1, k_b1, k_w2, k_b2 = jax.random.split(key, 5)
    # PyTorch nn.Linear default init: U(-1/sqrt(fan_in), +1/sqrt(fan_in)).
    w1 = jax.random.uniform(k_w1, (1, n_channels), jnp.float32, -1.0, 1.0)   # fan_in = 1
    b1 = jax.random.uniform(k_b1, (n_channels,), jnp.float32, -1.0, 1.0)
    bound2 = 1.0 / float(n_channels) ** 0.5
    w2 = jax.random.uniform(k_w2, (n_channels, n_channels), jnp.float32, -bound2, bound2)
    b2 = jax.random.uniform(k_b2, (n_channels,), jnp.float32, -bound2, bound2)
    t = jax.random.randint(k_t, (B,), 0, 1000).astype(jnp.float32)           # diffusion steps
    return t, w1, b1, w2, b2


def _check(t, w1, b1, w2, b2):
    params = prepare_time_embedding_params(w1, b1, w2, b2)
    out = jax.block_until_ready(time_embedding(t, params))
    ref = time_embedding_ref(t, w1, b1, w2, b2)
    assert out.shape == ref.shape, (out.shape, ref.shape)
    scale = float(jnp.max(jnp.abs(ref)))
    err = float(jnp.max(jnp.abs(out - ref)))
    # f32 kernel vs f32 XLA reference; tolerance covers MXU multi-pass f32 matmul
    # rounding and EUP transcendental approximation at |h| ~ 1e3.
    assert err <= 2e-2 * scale + 1e-5, f"max abs err {err} vs scale {scale}"


if __name__ == "__main__":
    key = jax.random.PRNGKey(0)
    k1, k2 = jax.random.split(key)

    # Module-native small size (grid (1, 1)).
    _check(*_make_case(k1, B=8, n_channels=32))
    # Larger case exercising batch tiling ("parallel" axis) + channel tiling with
    # the VMEM h cache ("arbitrary" axis): grid (3, 5).
    _check(*_make_case(k2, B=520, n_channels=1200))

    print("KERNEL_OK")
</pallas_src>

<mosaic_0001>
module attributes {stable_mosaic.version = 11 : i64} {
  func.func @time_embedding_kernel(%arg0: i32, %arg1: i32, %arg2: memref<8x1xf32, #tpu.memory_space<vmem>>, %arg3: memref<1x128xf32, #tpu.memory_space<vmem>>, %arg4: memref<1x128xf32, #tpu.memory_space<vmem>>, %arg5: memref<128x128xf32, #tpu.memory_space<vmem>>, %arg6: memref<1x128xf32, #tpu.memory_space<vmem>>, %arg7: memref<8x128xf32, #tpu.memory_space<vmem>>, %arg8: memref<8x128xf32, #tpu.memory_space<vmem>>) attributes {dimension_semantics = [#tpu.dimension_semantics<parallel>, #tpu.dimension_semantics<arbitrary>], iteration_bounds = array<i64: 1, 1>, scalar_prefetch = 0 : i64, scratch_operands = 1 : i64, tpu.core_type = #tpu.core_type<tc>, window_params = [{transform_indices = @transform_0, window_bounds = array<i64: 8, 1>}, {pipeline_mode = #tpu.pipeline_mode<synchronous>, transform_indices = @transform_1, window_bounds = array<i64: 1, 128>}, {pipeline_mode = #tpu.pipeline_mode<synchronous>, transform_indices = @transform_2, window_bounds = array<i64: 1, 128>}, {transform_indices = @transform_3, window_bounds = array<i64: 128, 128>}, {transform_indices = @transform_4, window_bounds = array<i64: 1, 128>}, {transform_indices = @transform_5, window_bounds = array<i64: 8, 128>}]} {
    %c0_i32 = arith.constant 0 : i32
    %0 = arith.cmpi eq, %arg1, %c0_i32 : i32
    %1 = arith.extui %0 : i1 to i32
    %c0_i32_0 = arith.constant 0 : i32
    %2 = arith.cmpi ne, %1, %c0_i32_0 : i32
    scf.if %2 {
      %c0_8 = arith.constant 0 : index
      %c0_9 = arith.constant 0 : index
      %10 = vector.load %arg2[%c0_8, %c0_9] : memref<8x1xf32, #tpu.memory_space<vmem>>, vector<8x1xf32>
      %c0_10 = arith.constant 0 : index
      %c0_11 = arith.constant 0 : index
      %11 = vector.load %arg3[%c0_10, %c0_11] : memref<1x128xf32, #tpu.memory_space<vmem>>, vector<1x128xf32>
      %12 = vector.broadcast %10 : vector<8x1xf32> to vector<8x128xf32>
      %13 = vector.broadcast %11 : vector<1x128xf32> to vector<8x128xf32>
      %14 = arith.mulf %12, %13 : vector<8x128xf32>
      %c0_12 = arith.constant 0 : index
      %c0_13 = arith.constant 0 : index
      %15 = vector.load %arg4[%c0_12, %c0_13] : memref<1x128xf32, #tpu.memory_space<vmem>>, vector<1x128xf32>
      %16 = vector.broadcast %15 : vector<1x128xf32> to vector<8x128xf32>
      %17 = arith.addf %14, %16 : vector<8x128xf32>
      %cst_14 = arith.constant 0.000000e+00 : f32
      %18 = vector.broadcast %cst_14 : f32 to vector<8x128xf32>
      %19 = arith.subf %18, %17 : vector<8x128xf32>
      %20 = math.exp %19 : vector<8x128xf32>
      %cst_15 = arith.constant 1.000000e+00 : f32
      %21 = vector.broadcast %cst_15 : f32 to vector<8x128xf32>
      %22 = arith.addf %21, %20 : vector<8x128xf32>
      %23 = arith.divf %17, %22 : vector<8x128xf32>
      %c0_16 = arith.constant 0 : index
      %c0_17 = arith.constant 0 : index
      %24 = vector.load %arg8[%c0_16, %c0_17] : memref<8x128xf32, #tpu.memory_space<vmem>>, vector<8x128xf32>
      tpu.vector_store %arg8[%c0_16, %c0_17], %23 {strides = array<i32>} : memref<8x128xf32, #tpu.memory_space<vmem>>, vector<8x128xf32>,
    } else {
    }
    %c0 = arith.constant 0 : index
    %c0_1 = arith.constant 0 : index
    %3 = vector.load %arg8[%c0, %c0_1] : memref<8x128xf32, #tpu.memory_space<vmem>>, vector<8x128xf32>
    %c0_2 = arith.constant 0 : index
    %c0_3 = arith.constant 0 : index
    %4 = vector.load %arg5[%c0_2, %c0_3] : memref<128x128xf32, #tpu.memory_space<vmem>>, vector<128x128xf32>
    %cst = arith.constant dense<0.000000e+00> : vector<8x128xf32>
    %5 = tpu.matmul %3, %4, %cst {dimension_numbers = #tpu.dot_dimension_numbers<[1], [0], [0], [1], [0, 0, 1, 1], [], []>} : vector<8x128xf32>, vector<128x128xf32>, vector<8x128xf32> -> vector<8x128xf32>
    %c0_4 = arith.constant 0 : index
    %c0_5 = arith.constant 0 : index
    %6 = vector.load %arg6[%c0_4, %c0_5] : memref<1x128xf32, #tpu.memory_space<vmem>>, vector<1x128xf32>
    %7 = vector.broadcast %6 : vector<1x128xf32> to vector<8x128xf32>
    %8 = arith.addf %5, %7 : vector<8x128xf32>
    %c0_6 = arith.constant 0 : index
    %c0_7 = arith.constant 0 : index
    %9 = vector.load %arg7[%c0_6, %c0_7] : memref<8x128xf32, #tpu.memory_space<vmem>>, vector<8x128xf32>
    tpu.vector_store %arg7[%c0_6, %c0_7], %8 {strides = array<i32>} : memref<8x128xf32, #tpu.memory_space<vmem>>, vector<8x128xf32>,
    return
  }
  func.func @transform_0(%arg0: i32, %arg1: i32) -> (i32, i32) {
    %c0_i32 = arith.constant 0 : i32
    %c0_i32_0 = arith.constant 0 : i32
    return %arg0, %c0_i32 : i32, i32
  }
  func.func @transform_1(%arg0: i32, %arg1: i32) -> (i32, i32) {
    %c0_i32 = arith.constant 0 : i32
    %c0_i32_0 = arith.constant 0 : i32
    %c0_i32_1 = arith.constant 0 : i32
    return %c0_i32, %c0_i32_0 : i32, i32
  }
  func.func @transform_2(%arg0: i32, %arg1: i32) -> (i32, i32) {
    %c0_i32 = arith.constant 0 : i32
    %c0_i32_0 = arith.constant 0 : i32
    %c0_i32_1 = arith.constant 0 : i32
    return %c0_i32, %c0_i32_0 : i32, i32
  }
  func.func @transform_3(%arg0: i32, %arg1: i32) -> (i32, i32) {
    %c0_i32 = arith.constant 0 : i32
    %c0_i32_0 = arith.constant 0 : i32
    return %c0_i32, %arg1 : i32, i32
  }
  func.func @transform_4(%arg0: i32, %arg1: i32) -> (i32, i32) {
    %c0_i32 = arith.constant 0 : i32
    %c0_i32_0 = arith.constant 0 : i32
    return %c0_i32, %arg1 : i32, i32
  }
  func.func @transform_5(%arg0: i32, %arg1: i32) -> (i32, i32) {
    %c0_i32 = arith.constant 0 : i32
    return %arg0, %arg1 : i32, i32
  }
}

</mosaic_0001>

<bundles_post_ra>
// kernel: tpu_custom_call.1
= control target key start
LH: loop header
LB: loop body
LE: loop exit
PB: predicated region body
PF: predicated region fallthrough
CT: control target
= control target key end

     0   :  { %10 = vsyncpa [#allocation4], 0  ;;  %s254_s0 = inlined_call_operand.vmem [shape: f32[8,1], index: 0, kind: input, shape index: {}]   ;;  %s255_s1 = inlined_call_operand.vmem [shape: f32[1,128], index: 1, kind: input, shape index: {}]   ;;  %s256_s2 = inlined_call_operand.vmem [shape: f32[1,128], index: 2, kind: input, shape index: {}]   ;;  %s257_s3 = inlined_call_operand.hbm [shape: f32[128,128], index: 3, kind: input, shape index: {}]   ;;  %s258_s4 = inlined_call_operand.vmem [shape: f32[1,128], index: 4, kind: input, shape index: {}]   ;;  %s259_s5 = inlined_call_operand.hbm [shape: f32[8,128], index: 5, kind: output, shape index: {}]  }
   0x1   :  { %11 = vsyncpa [#allocation5], 0  ;;  %s22_s20 = sshll.u32 %s257_s3, 4  ;;  %s201_s21 = smov [#allocation3]   ;;  %s23_s20 = int_to_ptr.hbm [resolvable:$true] %s22_s20 }
   0x2   :  { %s24_s22 = sshll.u32 %s201_s21, 4  ;;  %s202_s23 = smov 128   ;;  %s25_s22 = int_to_ptr.vmem [resolvable:$true] %s24_s22 }
   0x3   :  { %s203_s24 = smov 8  }
   0x4   :  { %30 = dma.hbm_to_vmem [thread:$0]  %s23_s20, 2048, %s25_s22, [#allocation4], %s202_s23, %s202_s23, %s203_s24  }
   0x5   :  { %197 = dma.done.wait [#allocation4], 2048  }
   0x6   :  { %198 = vsyncadd [#allocation4], 4294965248  ;;  %v204_v0 = vmov 0   ;;  %v41_v1 = vld [vmem:[%s254_s0] sm:$0xff]  ;;  %v93_v2 = vld [vmem:[#allocation3 + $0x78] sm:$0xff]  ;;  %s205_s29 = smov [#allocation6]  }
   0x7   :  { %141 = vset.pattern.permute.xlu0 %v204_v0  ;;  %98 = vmatpush.msra.mxu0 %v93_v2  ;;  %v92_v3 = vld [vmem:[#allocation3 + $0x70] sm:$0xff]  ;;  %v91_v4 = vld [vmem:[#allocation3 + $0x68] sm:$0xff]  ;;  %v90_v5 = vld [vmem:[#allocation3 + $0x60] sm:$0xff]  ;;  %s124_s30 = sshll.u32 %s205_s29, 4  ;;  %s126_s8 = sshll.u32 %s259_s5, 4  ;;  %s125_s30 = int_to_ptr.vmem [resolvable:$true] %s124_s30  ;;  %s127_s8 = int_to_ptr.hbm [resolvable:$true] %s126_s8 }
   0x8   :  { %45 = vperm.xlu0 %141, %v41_v1   ;;  %v89_v6 = vld [vmem:[#allocation3 + $0x58] sm:$0xff]  ;;  %v88_v7 = vld [vmem:[#allocation3 + $0x50] sm:$0xff]  ;;  %v87_v8 = vld [vmem:[#allocation3 + $0x48] sm:$0xff] }
   0x9   :  { %99 = vmatpush.msra.mxu0 %v92_v3  ;;  %v86_v9 = vld [vmem:[#allocation3 + $0x40] sm:$0xff]  ;;  %v85_v10 = vld [vmem:[#allocation3 + $0x38] sm:$0xff]  ;;  %v84_v11 = vld [vmem:[#allocation3 + $0x30] sm:$0xff] }
   0xa   :  { %v83_v12 = vld [vmem:[#allocation3 + $0x28] sm:$0xff]  ;;  %v82_v13 = vld [vmem:[#allocation3 + $0x20] sm:$0xff]  ;;  %v81_v14 = vld [vmem:[#allocation3 + $0x18] sm:$0xff] }
   0xb   :  { %100 = vmatpush.msra.mxu0 %v91_v4  ;;  %v142_v15 = vld [vmem:[%s255_s1] ss:$0 sm:$0xff]  ;;  %v80_v16 = vld [vmem:[#allocation3 + $0x10] sm:$0xff]  ;;  %v79_v18 = vld [vmem:[#allocation3 + $0x8] sm:$0xff] }
   0xc   :  { %v143_v17 = vld [vmem:[%s256_s2] ss:$0 sm:$0xff] }
   0xd   :  { %101 = vmatpush.msra.mxu0 %v90_v5  ;;  %v78_v21 = vld [vmem:[#allocation3] sm:$0xff] }
   0xe   :  { %v144_v38 = vld [vmem:[%s258_s4] ss:$0 sm:$0xff] }
   0xf   :  { %102 = vmatpush.msra.mxu0 %v89_v6 }
  0x11   :  { %103 = vmatpush.msra.mxu0 %v88_v7 }
  0x13   :  { %104 = vmatpush.msra.mxu0 %v87_v8 }
  0x15   :  { %105 = vmatpush.msra.mxu0 %v86_v9 }
  0x17   :  { %106 = vmatpush.msra.mxu0 %v85_v10 }
  0x19   :  { %107 = vmatpush.msra.mxu0 %v84_v11 }
  0x1b   :  { %108 = vmatpush.msra.mxu0 %v83_v12 }
  0x1d   :  { %109 = vmatpush.msra.mxu0 %v82_v13 }
  0x1f   :  { %110 = vmatpush.msra.mxu0 %v81_v14 }
  0x21   :  { %111 = vmatpush.msra.mxu0 %v80_v16 }
  0x23   :  { %112 = vmatpush.msra.mxu0 %v79_v18 }
  0x25   :  { %113 = vmatpush.msra.mxu0 %v78_v21 }
  0x7a   :  { %v46_v19 = vpop.permute.xlu0 %45 }
  0x7b   :  { %v51_v20 = vmul.f32 %v142_v15, %v46_v19 }
  0x7d   :  { %v56_v22 = vadd.f32 %v143_v17, %v51_v20 }
  0x7f   :  { %v57_v23 = vsub.f32 0.0, %v56_v22 }
  0x81   :  { %v58_v24 = vmul.f32 1.442695, %v57_v23 }
  0x83   :  { %145 = vpow2.f32 %v58_v24 }
  0x89   :  { %v146_v25 = vpop.eup %145 }
  0x8a   :  { %v60_v26 = vadd.f32 1.0, %v146_v25 }
  0x8c   :  { %147 = vrcp.f32 %v60_v26  ;;  %v72_v30 = vand.u32 2147483648, %v60_v26  ;;  %v70_v32 = vand.u32 2147483647, %v60_v26  ;;  %vm66_vm1 = vweird.f32 %v60_v26 }
  0x8e   :  { %v73_v34 = vor.u32 1.1754944e-38, %v72_v30  ;;  %vm71_vm3 = vcmp.eq.f32.partialorder %v70_v32, 8.507059e+37 }
  0x92   :  { %v148_v27 = vpop.eup %147 }
  0x93   :  { %v62_v28 = vmul.f32 %v148_v27, %v60_v26  ;;  %vm67_vm0 = vweird.f32 %v148_v27 }
  0x94   :  { %vm68_vm2 = vmor %vm66_vm1, %vm67_vm0 }
  0x95   :  { %v63_v29 = vsub.f32 1.0, %v62_v28 }
  0x97   :  { %v64_v31 = vmul.f32 %v148_v27, %v63_v29 }
  0x99   :  { %v65_v33 = vadd.f32 %v148_v27, %v64_v31 }
  0x9b   :  { %v69_v35 = vsel %vm68_vm2, %v148_v27, %v65_v33 }
  0x9c   :  { %v74_v36 = vsel %vm71_vm3, %v73_v34, %v69_v35 }
  0x9d   :  { %v75_v37 = vmul.f32 %v74_v36, %v56_v22 }
  0x9f   :  { %114 = vmatmul.f32.vlgmr.msra.gmra.mxu0 %v75_v37 }
 0x11c   :  { %v115_v39 = vpop.f32.mrf.mxu0 }
 0x11d   :  { %v116_v40 = vadd.f32 %v144_v38, %v115_v39 }
 0x11f   :  { %118 = vst [vmem:[#allocation6] sm:$0xff] %v116_v40 }
 0x120   :  { %129 = dma.vmem_to_hbm [thread:$0]  %s125_s30, 128, %s127_s8, [#allocation5]  }
 0x121   :  { %199 = dma.done.wait [#allocation5], 128  }
 0x122   :  { %200 = vsyncadd [#allocation5], 4294967168 }
 0x123   :  { %134 = vsyncpa [#allocation4], 1 }
 0x124   :  { %135 = vsyncpa [#allocation5], 1 }

</bundles_post_ra>
